<compile_context>
chip_gen: v5e
topology: v5e:2x2
jax: 0.10.0
libtpu: 0.0.40
codegen_flags: <defaults>
</compile_context>

<pallas_src>
import jax
import jax.numpy as jnp
from jax.experimental import pallas as pl
from jax.experimental.pallas import tpu as pltpu

BN_EPS = 1e-5


def _round_up(x, m):
    return (x + m - 1) // m * m


# ----------------------------------------------------------------------------
# Kernel
# ----------------------------------------------------------------------------
def _ppidnn_kernel(d1_ref, d2_ref, cell_ref,
                   wc1_ref, bc1_ref, wc2_ref, bc2_ref, wc3_ref, bc3_ref,
                   wc4_ref, bc4_ref,
                   w1a_ref, w1b_ref, w1c_ref, b1_ref,
                   w2_ref, b2_ref, w3_ref, b3_ref,
                   out_ref):
    f32 = jnp.float32
    cdt = w1a_ref.dtype  # matmul-operand dtype (f32 or bf16); accumulation is f32

    def leaky(x):  # LeakyReLU(negative_slope=0.01)
        return jnp.maximum(x, 0.01 * x)

    tb, cs, e = cell_ref.shape

    # ---- Conv branch: 4x (Conv1d k=1 with BN folded) + LeakyReLU ------------
    # kernel_size=1 => each spatial position is an independent channel matmul,
    # so collapse (tb, cs) into one big M dimension for the MXU.
    x = cell_ref[...].reshape(tb * cs, e)
    h = leaky(jnp.dot(x, wc1_ref[...], preferred_element_type=f32) + bc1_ref[...]).astype(cdt)
    h = leaky(jnp.dot(h, wc2_ref[...], preferred_element_type=f32) + bc2_ref[...]).astype(cdt)
    h = leaky(jnp.dot(h, wc3_ref[...], preferred_element_type=f32) + bc3_ref[...])
    # Last bottleneck (64 -> 1): lane reduction instead of an N=1 MXU pass.
    cell_col = leaky(jnp.sum(h * wc4_ref[...], axis=-1, keepdims=True) + bc4_ref[...])
    cell_out = cell_col.reshape(tb, cs).astype(cdt)          # == conv(...).squeeze(1)

    # ---- DNN ---------------------------------------------------------------
    # torch.cat([d1, d2, cell], 1) @ W1 folded into three accumulating matmuls.
    h1 = (jnp.dot(d1_ref[...], w1a_ref[...], preferred_element_type=f32)
          + jnp.dot(d2_ref[...], w1b_ref[...], preferred_element_type=f32)
          + jnp.dot(cell_out, w1c_ref[...], preferred_element_type=f32)
          + b1_ref[...])
    h1 = leaky(h1).astype(cdt)                                # BN1 folded into W2/b2
    h2 = leaky(jnp.dot(h1, w2_ref[...], preferred_element_type=f32) + b2_ref[...])
    # BN2 folded into W3/b3; final Linear (N=1) as a lane reduction.
    out = jnp.sum(h2 * w3_ref[...], axis=-1, keepdims=True) + b3_ref[...]
    out_ref[...] = out.astype(out_ref.dtype)


# ----------------------------------------------------------------------------
# Parameter folding (eval-mode BatchNorm folded into neighbouring linear maps)
# ----------------------------------------------------------------------------
def _fold_params(p, drug_size, compute_dtype):
    # TODO(synk): training-mode BatchNorm (batch statistics) is not implemented;
    # this reproduces the eval/inference forward with running stats.
    eps = BN_EPS
    f32 = jnp.float32

    conv = []
    for layer in p["conv"]:
        w_io = layer["w"][:, :, 0].T.astype(f32)                   # [in, out]
        s = layer["gamma"] * jax.lax.rsqrt(layer["var"] + eps)
        conv.append((w_io * s[None, :],
                     (layer["b"] - layer["mean"]) * s + layer["beta"]))
    (wc1, bc1), (wc2, bc2), (wc3, bc3), (wc4, bc4) = conv
    wc4row = wc4.T                                                  # [1, 64]

    # Linear1 split into row blocks (replaces the concat).
    w1_io = p["lin1_w"].T                                           # [D_in, H]
    w1a = w1_io[:drug_size]
    w1b = w1_io[drug_size:2 * drug_size]
    w1c = w1_io[2 * drug_size:]
    b1 = p["lin1_b"]

    # BN1 (after LeakyReLU) folded into Linear2.
    s1 = p["bn1_gamma"] * jax.lax.rsqrt(p["bn1_var"] + eps)
    t1 = p["bn1_beta"] - p["bn1_mean"] * s1
    w2_io = p["lin2_w"].T                                           # [H, H2]
    w2f = s1[:, None] * w2_io
    b2f = t1 @ w2_io + p["lin2_b"]

    # BN2 folded into Linear3; keep W3 as a (1, H2) row for the lane reduce.
    s2 = p["bn2_gamma"] * jax.lax.rsqrt(p["bn2_var"] + eps)
    t2 = p["bn2_beta"] - p["bn2_mean"] * s2
    w3_io = p["lin3_w"].T                                           # [H2, 1]
    w3row = (s2 * w3_io[:, 0])[None, :]                             # [1, H2]
    b3f = (t2 @ w3_io + p["lin3_b"]).reshape(1, 1)

    row = lambda v: v.reshape(1, -1).astype(f32)      # biases / reduce rows stay f32
    mm = lambda w: w.astype(compute_dtype)            # MXU operands (optionally bf16)
    return [
        mm(wc1), row(bc1), mm(wc2), row(bc2), mm(wc3), row(bc3),
        row(wc4row), bc4.reshape(1, 1).astype(f32),
        mm(w1a), mm(w1b), mm(w1c), row(b1),
        mm(w2f), row(b2f),
        row(w3row), b3f.astype(f32),
    ]


# ----------------------------------------------------------------------------
# Wrapper
# ----------------------------------------------------------------------------
def ppidnn_forward(drug1_feat, drug2_feat, cell_feat, params, *,
                   batch_tile=None, compute_dtype=jnp.float32):
    """drug1_feat/drug2_feat: [B, drug_size]; cell_feat: [B, cell_size, emb_size]."""
    B, drug_size = drug1_feat.shape
    _, cell_size, emb_size = cell_feat.shape

    weights = _fold_params(params, drug_size, compute_dtype)

    if batch_tile is None:
        # Fill the MXU M dimension (>=128/256 where possible); single step for small B.
        batch_tile = min(_round_up(B, 8), 256)
    tb = _round_up(batch_tile, 8)
    Bp = _round_up(B, tb)

    d1 = drug1_feat.astype(compute_dtype)
    d2 = drug2_feat.astype(compute_dtype)
    cf = cell_feat.astype(compute_dtype)
    if Bp != B:  # pad the tail tile instead of shrinking the tile
        pad = Bp - B
        d1 = jnp.pad(d1, ((0, pad), (0, 0)))
        d2 = jnp.pad(d2, ((0, pad), (0, 0)))
        cf = jnp.pad(cf, ((0, pad), (0, 0), (0, 0)))

    grid = (Bp // tb,)

    def full2d(arr):
        return pl.BlockSpec(arr.shape, lambda i: (0, 0))

    in_specs = [
        pl.BlockSpec((tb, drug_size), lambda i: (i, 0)),
        pl.BlockSpec((tb, drug_size), lambda i: (i, 0)),
        pl.BlockSpec((tb, cell_size, emb_size), lambda i: (i, 0, 0)),
    ] + [full2d(w) for w in weights]

    out = pl.pallas_call(
        _ppidnn_kernel,
        out_shape=jax.ShapeDtypeStruct((Bp, 1), jnp.float32),
        grid=grid,
        in_specs=in_specs,
        out_specs=pl.BlockSpec((tb, 1), lambda i: (i, 0)),
        compiler_params=pltpu.CompilerParams(
            dimension_semantics=("parallel",),
            vmem_limit_bytes=48 * 1024 * 1024,   # stays under v7x's 64 MiB physical
        ),
    )(d1, d2, cf, *weights)
    return out[:B]


# ----------------------------------------------------------------------------
# Pure-JAX reference (mirrors the PyTorch forward, unfolded, eval mode)
# ----------------------------------------------------------------------------
def ppidnn_reference(drug1_feat, drug2_feat, cell_feat, p):
    eps = BN_EPS
    hp = jax.lax.Precision.HIGHEST
    leaky = lambda x: jnp.maximum(x, 0.01 * x)

    x = cell_feat                                       # channel-last == permuted conv input
    for layer in p["conv"]:
        w_io = layer["w"][:, :, 0].T
        x = jnp.einsum("ble,eo->blo", x, w_io, precision=hp) + layer["b"]
        s = layer["gamma"] * jax.lax.rsqrt(layer["var"] + eps)
        x = leaky((x - layer["mean"]) * s + layer["beta"])
    cell_out = x[:, :, 0]                               # .squeeze(1) in channel-first terms

    feat = jnp.concatenate([drug1_feat, drug2_feat, cell_out], axis=1)
    h = jnp.dot(feat, p["lin1_w"].T, precision=hp) + p["lin1_b"]
    h = leaky(h)
    s1 = p["bn1_gamma"] * jax.lax.rsqrt(p["bn1_var"] + eps)
    h = (h - p["bn1_mean"]) * s1 + p["bn1_beta"]
    h = jnp.dot(h, p["lin2_w"].T, precision=hp) + p["lin2_b"]
    h = leaky(h)
    s2 = p["bn2_gamma"] * jax.lax.rsqrt(p["bn2_var"] + eps)
    h = (h - p["bn2_mean"]) * s2 + p["bn2_beta"]
    return jnp.dot(h, p["lin3_w"].T, precision=hp) + p["lin3_b"]


# ----------------------------------------------------------------------------
# Parameter init (torch-layout params, nontrivial BN running stats)
# ----------------------------------------------------------------------------
def init_params(key, drug_size, cell_size, emb_size, hidden_size):
    h, h2 = hidden_size, hidden_size // 2
    d_in = 2 * drug_size + cell_size
    keys = iter(jax.random.split(key, 64))
    nk = lambda: next(keys)

    def bn(c):
        return dict(gamma=1.0 + 0.2 * jax.random.normal(nk(), (c,), jnp.float32),
                    beta=0.1 * jax.random.normal(nk(), (c,), jnp.float32),
                    mean=0.1 * jax.random.normal(nk(), (c,), jnp.float32),
                    var=jax.random.uniform(nk(), (c,), jnp.float32, 0.5, 1.5))

    conv = []
    for cin, cout in [(emb_size, 64), (64, 128), (128, 64), (64, 1)]:
        layer = dict(w=jax.random.normal(nk(), (cout, cin, 1), jnp.float32) / jnp.sqrt(cin),
                     b=0.05 * jax.random.normal(nk(), (cout,), jnp.float32))
        layer.update(bn(cout))
        conv.append(layer)

    p = dict(conv=conv,
             lin1_w=jax.random.normal(nk(), (h, d_in), jnp.float32) / jnp.sqrt(d_in),
             lin1_b=0.05 * jax.random.normal(nk(), (h,), jnp.float32),
             lin2_w=jax.random.normal(nk(), (h2, h), jnp.float32) / jnp.sqrt(h),
             lin2_b=0.05 * jax.random.normal(nk(), (h2,), jnp.float32),
             lin3_w=jax.random.normal(nk(), (1, h2), jnp.float32) / jnp.sqrt(h2),
             lin3_b=0.05 * jax.random.normal(nk(), (1,), jnp.float32))
    bn1 = bn(h); bn2 = bn(h2)
    p.update({"bn1_" + k: v for k, v in bn1.items()})
    p.update({"bn2_" + k: v for k, v in bn2.items()})
    return p


if __name__ == "__main__":
    drug_size, cell_size, emb_size, hidden_size = 32, 16, 16, 64
    B = 8

    key = jax.random.PRNGKey(0)
    kp, k1, k2, k3 = jax.random.split(key, 4)
    params = init_params(kp, drug_size, cell_size, emb_size, hidden_size)

    drug1_feat = jax.random.normal(k1, (B, drug_size), jnp.float32)
    drug2_feat = jax.random.normal(k2, (B, drug_size), jnp.float32)
    cell_feat = jax.random.normal(k3, (B, cell_size, emb_size), jnp.float32)

    out = ppidnn_forward(drug1_feat, drug2_feat, cell_feat, params)
    jax.block_until_ready(out)
    assert out.shape == (B, 1) and out.dtype == jnp.float32

    ref = ppidnn_reference(drug1_feat, drug2_feat, cell_feat, params)
    assert bool(jnp.allclose(out, ref, rtol=2e-2, atol=2e-2)), (out, ref)

    # bf16 matmul operands (f32 accumulation) — halves HBM/VMEM weight traffic.
    out_bf16 = ppidnn_forward(drug1_feat, drug2_feat, cell_feat, params,
                              compute_dtype=jnp.bfloat16)
    jax.block_until_ready(out_bf16)
    assert out_bf16.shape == (B, 1) and bool(jnp.all(jnp.isfinite(out_bf16)))

    print("KERNEL_OK")
</pallas_src>

<mosaic_0001>
module attributes {stable_mosaic.version = 11 : i64} {
  func.func @_ppidnn_kernel(%arg0: i32, %arg1: memref<8x32xf32, #tpu.memory_space<vmem>>, %arg2: memref<8x32xf32, #tpu.memory_space<vmem>>, %arg3: memref<8x16x16xf32, #tpu.memory_space<vmem>>, %arg4: memref<16x64xf32, #tpu.memory_space<vmem>>, %arg5: memref<1x64xf32, #tpu.memory_space<vmem>>, %arg6: memref<64x128xf32, #tpu.memory_space<vmem>>, %arg7: memref<1x128xf32, #tpu.memory_space<vmem>>, %arg8: memref<128x64xf32, #tpu.memory_space<vmem>>, %arg9: memref<1x64xf32, #tpu.memory_space<vmem>>, %arg10: memref<1x64xf32, #tpu.memory_space<vmem>>, %arg11: memref<1x1xf32, #tpu.memory_space<vmem>>, %arg12: memref<32x64xf32, #tpu.memory_space<vmem>>, %arg13: memref<32x64xf32, #tpu.memory_space<vmem>>, %arg14: memref<16x64xf32, #tpu.memory_space<vmem>>, %arg15: memref<1x64xf32, #tpu.memory_space<vmem>>, %arg16: memref<64x32xf32, #tpu.memory_space<vmem>>, %arg17: memref<1x32xf32, #tpu.memory_space<vmem>>, %arg18: memref<1x32xf32, #tpu.memory_space<vmem>>, %arg19: memref<1x1xf32, #tpu.memory_space<vmem>>, %arg20: memref<8x1xf32, #tpu.memory_space<vmem>>) attributes {dimension_semantics = [#tpu.dimension_semantics<parallel>], iteration_bounds = array<i64: 1>, scalar_prefetch = 0 : i64, scratch_operands = 0 : i64, tpu.core_type = #tpu.core_type<tc>, window_params = [{transform_indices = @transform_0, window_bounds = array<i64: 8, 32>}, {transform_indices = @transform_1, window_bounds = array<i64: 8, 32>}, {transform_indices = @transform_2, window_bounds = array<i64: 8, 16, 16>}, {pipeline_mode = #tpu.pipeline_mode<synchronous>, transform_indices = @transform_3, window_bounds = array<i64: 16, 64>}, {pipeline_mode = #tpu.pipeline_mode<synchronous>, transform_indices = @transform_4, window_bounds = array<i64: 1, 64>}, {pipeline_mode = #tpu.pipeline_mode<synchronous>, transform_indices = @transform_5, window_bounds = array<i64: 64, 128>}, {pipeline_mode = #tpu.pipeline_mode<synchronous>, transform_indices = @transform_6, window_bounds = array<i64: 1, 128>}, {pipeline_mode = #tpu.pipeline_mode<synchronous>, transform_indices = @transform_7, window_bounds = array<i64: 128, 64>}, {pipeline_mode = #tpu.pipeline_mode<synchronous>, transform_indices = @transform_8, window_bounds = array<i64: 1, 64>}, {pipeline_mode = #tpu.pipeline_mode<synchronous>, transform_indices = @transform_9, window_bounds = array<i64: 1, 64>}, {pipeline_mode = #tpu.pipeline_mode<synchronous>, transform_indices = @transform_10, window_bounds = array<i64: 1, 1>}, {pipeline_mode = #tpu.pipeline_mode<synchronous>, transform_indices = @transform_11, window_bounds = array<i64: 32, 64>}, {pipeline_mode = #tpu.pipeline_mode<synchronous>, transform_indices = @transform_12, window_bounds = array<i64: 32, 64>}, {pipeline_mode = #tpu.pipeline_mode<synchronous>, transform_indices = @transform_13, window_bounds = array<i64: 16, 64>}, {pipeline_mode = #tpu.pipeline_mode<synchronous>, transform_indices = @transform_14, window_bounds = array<i64: 1, 64>}, {pipeline_mode = #tpu.pipeline_mode<synchronous>, transform_indices = @transform_15, window_bounds = array<i64: 64, 32>}, {pipeline_mode = #tpu.pipeline_mode<synchronous>, transform_indices = @transform_16, window_bounds = array<i64: 1, 32>}, {pipeline_mode = #tpu.pipeline_mode<synchronous>, transform_indices = @transform_17, window_bounds = array<i64: 1, 32>}, {pipeline_mode = #tpu.pipeline_mode<synchronous>, transform_indices = @transform_18, window_bounds = array<i64: 1, 1>}, {transform_indices = @transform_19, window_bounds = array<i64: 8, 1>}]} {
    %c0 = arith.constant 0 : index
    %c0_0 = arith.constant 0 : index
    %c0_1 = arith.constant 0 : index
    %0 = vector.load %arg3[%c0, %c0_0, %c0_1] : memref<8x16x16xf32, #tpu.memory_space<vmem>>, vector<8x16x16xf32>
    %1 = vector.shape_cast %0 : vector<8x16x16xf32> to vector<128x16xf32>
    %c0_2 = arith.constant 0 : index
    %c0_3 = arith.constant 0 : index
    %2 = vector.load %arg4[%c0_2, %c0_3] : memref<16x64xf32, #tpu.memory_space<vmem>>, vector<16x64xf32>
    %cst = arith.constant dense<0.000000e+00> : vector<128x64xf32>
    %3 = tpu.matmul %1, %2, %cst {dimension_numbers = #tpu.dot_dimension_numbers<[1], [0], [0], [1], [0, 0, 1, 1], [], []>} : vector<128x16xf32>, vector<16x64xf32>, vector<128x64xf32> -> vector<128x64xf32>
    %c0_4 = arith.constant 0 : index
    %c0_5 = arith.constant 0 : index
    %4 = vector.load %arg5[%c0_4, %c0_5] : memref<1x64xf32, #tpu.memory_space<vmem>>, vector<1x64xf32>
    %5 = vector.broadcast %4 : vector<1x64xf32> to vector<128x64xf32>
    %6 = arith.addf %3, %5 : vector<128x64xf32>
    %cst_6 = arith.constant 0.00999999977 : f32
    %7 = vector.broadcast %cst_6 : f32 to vector<128x64xf32>
    %8 = arith.mulf %7, %6 : vector<128x64xf32>
    %9 = arith.maximumf %6, %8 : vector<128x64xf32>
    %c0_7 = arith.constant 0 : index
    %c0_8 = arith.constant 0 : index
    %10 = vector.load %arg6[%c0_7, %c0_8] : memref<64x128xf32, #tpu.memory_space<vmem>>, vector<64x128xf32>
    %cst_9 = arith.constant dense<0.000000e+00> : vector<128x128xf32>
    %11 = tpu.matmul %9, %10, %cst_9 {dimension_numbers = #tpu.dot_dimension_numbers<[1], [0], [0], [1], [0, 0, 1, 1], [], []>} : vector<128x64xf32>, vector<64x128xf32>, vector<128x128xf32> -> vector<128x128xf32>
    %c0_10 = arith.constant 0 : index
    %c0_11 = arith.constant 0 : index
    %12 = vector.load %arg7[%c0_10, %c0_11] : memref<1x128xf32, #tpu.memory_space<vmem>>, vector<1x128xf32>
    %13 = vector.broadcast %12 : vector<1x128xf32> to vector<128x128xf32>
    %14 = arith.addf %11, %13 : vector<128x128xf32>
    %cst_12 = arith.constant 0.00999999977 : f32
    %15 = vector.broadcast %cst_12 : f32 to vector<128x128xf32>
    %16 = arith.mulf %15, %14 : vector<128x128xf32>
    %17 = arith.maximumf %14, %16 : vector<128x128xf32>
    %c0_13 = arith.constant 0 : index
    %c0_14 = arith.constant 0 : index
    %18 = vector.load %arg8[%c0_13, %c0_14] : memref<128x64xf32, #tpu.memory_space<vmem>>, vector<128x64xf32>
    %cst_15 = arith.constant dense<0.000000e+00> : vector<128x64xf32>
    %19 = tpu.matmul %17, %18, %cst_15 {dimension_numbers = #tpu.dot_dimension_numbers<[1], [0], [0], [1], [0, 0, 1, 1], [], []>} : vector<128x128xf32>, vector<128x64xf32>, vector<128x64xf32> -> vector<128x64xf32>
    %c0_16 = arith.constant 0 : index
    %c0_17 = arith.constant 0 : index
    %20 = vector.load %arg9[%c0_16, %c0_17] : memref<1x64xf32, #tpu.memory_space<vmem>>, vector<1x64xf32>
    %21 = vector.broadcast %20 : vector<1x64xf32> to vector<128x64xf32>
    %22 = arith.addf %19, %21 : vector<128x64xf32>
    %cst_18 = arith.constant 0.00999999977 : f32
    %23 = vector.broadcast %cst_18 : f32 to vector<128x64xf32>
    %24 = arith.mulf %23, %22 : vector<128x64xf32>
    %25 = arith.maximumf %22, %24 : vector<128x64xf32>
    %c0_19 = arith.constant 0 : index
    %c0_20 = arith.constant 0 : index
    %26 = vector.load %arg10[%c0_19, %c0_20] : memref<1x64xf32, #tpu.memory_space<vmem>>, vector<1x64xf32>
    %27 = vector.broadcast %26 : vector<1x64xf32> to vector<128x64xf32>
    %28 = arith.mulf %25, %27 : vector<128x64xf32>
    %cst_21 = arith.constant dense<0.000000e+00> : vector<128xf32>
    %29 = vector.multi_reduction <add>, %28, %cst_21 [1] : vector<128x64xf32> to vector<128xf32>
    %30 = vector.shape_cast %29 : vector<128xf32> to vector<128x1xf32>
    %c0_22 = arith.constant 0 : index
    %c0_23 = arith.constant 0 : index
    %31 = vector.load %arg11[%c0_22, %c0_23] : memref<1x1xf32, #tpu.memory_space<vmem>>, vector<1x1xf32>
    %32 = vector.broadcast %31 : vector<1x1xf32> to vector<128x1xf32>
    %33 = arith.addf %30, %32 : vector<128x1xf32>
    %cst_24 = arith.constant 0.00999999977 : f32
    %34 = vector.broadcast %cst_24 : f32 to vector<128x1xf32>
    %35 = arith.mulf %34, %33 : vector<128x1xf32>
    %36 = arith.maximumf %33, %35 : vector<128x1xf32>
    %37 = vector.shape_cast %36 : vector<128x1xf32> to vector<8x16xf32>
    %c0_25 = arith.constant 0 : index
    %c0_26 = arith.constant 0 : index
    %38 = vector.load %arg1[%c0_25, %c0_26] : memref<8x32xf32, #tpu.memory_space<vmem>>, vector<8x32xf32>
    %c0_27 = arith.constant 0 : index
    %c0_28 = arith.constant 0 : index
    %39 = vector.load %arg12[%c0_27, %c0_28] : memref<32x64xf32, #tpu.memory_space<vmem>>, vector<32x64xf32>
    %cst_29 = arith.constant dense<0.000000e+00> : vector<8x64xf32>
    %40 = tpu.matmul %38, %39, %cst_29 {dimension_numbers = #tpu.dot_dimension_numbers<[1], [0], [0], [1], [0, 0, 1, 1], [], []>} : vector<8x32xf32>, vector<32x64xf32>, vector<8x64xf32> -> vector<8x64xf32>
    %c0_30 = arith.constant 0 : index
    %c0_31 = arith.constant 0 : index
    %41 = vector.load %arg2[%c0_30, %c0_31] : memref<8x32xf32, #tpu.memory_space<vmem>>, vector<8x32xf32>
    %c0_32 = arith.constant 0 : index
    %c0_33 = arith.constant 0 : index
    %42 = vector.load %arg13[%c0_32, %c0_33] : memref<32x64xf32, #tpu.memory_space<vmem>>, vector<32x64xf32>
    %cst_34 = arith.constant dense<0.000000e+00> : vector<8x64xf32>
    %43 = tpu.matmul %41, %42, %cst_34 {dimension_numbers = #tpu.dot_dimension_numbers<[1], [0], [0], [1], [0, 0, 1, 1], [], []>} : vector<8x32xf32>, vector<32x64xf32>, vector<8x64xf32> -> vector<8x64xf32>
    %44 = arith.addf %40, %43 : vector<8x64xf32>
    %c0_35 = arith.constant 0 : index
    %c0_36 = arith.constant 0 : index
    %45 = vector.load %arg14[%c0_35, %c0_36] : memref<16x64xf32, #tpu.memory_space<vmem>>, vector<16x64xf32>
    %cst_37 = arith.constant dense<0.000000e+00> : vector<8x64xf32>
    %46 = tpu.matmul %37, %45, %cst_37 {dimension_numbers = #tpu.dot_dimension_numbers<[1], [0], [0], [1], [0, 0, 1, 1], [], []>} : vector<8x16xf32>, vector<16x64xf32>, vector<8x64xf32> -> vector<8x64xf32>
    %47 = arith.addf %44, %46 : vector<8x64xf32>
    %c0_38 = arith.constant 0 : index
    %c0_39 = arith.constant 0 : index
    %48 = vector.load %arg15[%c0_38, %c0_39] : memref<1x64xf32, #tpu.memory_space<vmem>>, vector<1x64xf32>
    %49 = vector.broadcast %48 : vector<1x64xf32> to vector<8x64xf32>
    %50 = arith.addf %47, %49 : vector<8x64xf32>
    %cst_40 = arith.constant 0.00999999977 : f32
    %51 = vector.broadcast %cst_40 : f32 to vector<8x64xf32>
    %52 = arith.mulf %51, %50 : vector<8x64xf32>
    %53 = arith.maximumf %50, %52 : vector<8x64xf32>
    %c0_41 = arith.constant 0 : index
    %c0_42 = arith.constant 0 : index
    %54 = vector.load %arg16[%c0_41, %c0_42] : memref<64x32xf32, #tpu.memory_space<vmem>>, vector<64x32xf32>
    %cst_43 = arith.constant dense<0.000000e+00> : vector<8x32xf32>
    %55 = tpu.matmul %53, %54, %cst_43 {dimension_numbers = #tpu.dot_dimension_numbers<[1], [0], [0], [1], [0, 0, 1, 1], [], []>} : vector<8x64xf32>, vector<64x32xf32>, vector<8x32xf32> -> vector<8x32xf32>
    %c0_44 = arith.constant 0 : index
    %c0_45 = arith.constant 0 : index
    %56 = vector.load %arg17[%c0_44, %c0_45] : memref<1x32xf32, #tpu.memory_space<vmem>>, vector<1x32xf32>
    %57 = vector.broadcast %56 : vector<1x32xf32> to vector<8x32xf32>
    %58 = arith.addf %55, %57 : vector<8x32xf32>
    %cst_46 = arith.constant 0.00999999977 : f32
    %59 = vector.broadcast %cst_46 : f32 to vector<8x32xf32>
    %60 = arith.mulf %59, %58 : vector<8x32xf32>
    %61 = arith.maximumf %58, %60 : vector<8x32xf32>
    %c0_47 = arith.constant 0 : index
    %c0_48 = arith.constant 0 : index
    %62 = vector.load %arg18[%c0_47, %c0_48] : memref<1x32xf32, #tpu.memory_space<vmem>>, vector<1x32xf32>
    %63 = vector.broadcast %62 : vector<1x32xf32> to vector<8x32xf32>
    %64 = arith.mulf %61, %63 : vector<8x32xf32>
    %cst_49 = arith.constant dense<0.000000e+00> : vector<8xf32>
    %65 = vector.multi_reduction <add>, %64, %cst_49 [1] : vector<8x32xf32> to vector<8xf32>
    %66 = vector.shape_cast %65 : vector<8xf32> to vector<8x1xf32>
    %c0_50 = arith.constant 0 : index
    %c0_51 = arith.constant 0 : index
    %67 = vector.load %arg19[%c0_50, %c0_51] : memref<1x1xf32, #tpu.memory_space<vmem>>, vector<1x1xf32>
    %68 = vector.broadcast %67 : vector<1x1xf32> to vector<8x1xf32>
    %69 = arith.addf %66, %68 : vector<8x1xf32>
    %c0_52 = arith.constant 0 : index
    %c0_53 = arith.constant 0 : index
    %70 = vector.load %arg20[%c0_52, %c0_53] : memref<8x1xf32, #tpu.memory_space<vmem>>, vector<8x1xf32>
    tpu.vector_store %arg20[%c0_52, %c0_53], %69 {strides = array<i32>} : memref<8x1xf32, #tpu.memory_space<vmem>>, vector<8x1xf32>,
    return
  }
  func.func @transform_0(%arg0: i32) -> (i32, i32) {
    %c0_i32 = arith.constant 0 : i32
    %c0_i32_0 = arith.constant 0 : i32
    return %arg0, %c0_i32 : i32, i32
  }
  func.func @transform_1(%arg0: i32) -> (i32, i32) {
    %c0_i32 = arith.constant 0 : i32
    %c0_i32_0 = arith.constant 0 : i32
    return %arg0, %c0_i32 : i32, i32
  }
  func.func @transform_2(%arg0: i32) -> (i32, i32, i32) {
    %c0_i32 = arith.constant 0 : i32
    %c0_i32_0 = arith.constant 0 : i32
    %c0_i32_1 = arith.constant 0 : i32
    return %arg0, %c0_i32, %c0_i32_0 : i32, i32, i32
  }
  func.func @transform_3(%arg0: i32) -> (i32, i32) {
    %c0_i32 = arith.constant 0 : i32
    %c0_i32_0 = arith.constant 0 : i32
    %c0_i32_1 = arith.constant 0 : i32
    return %c0_i32, %c0_i32_0 : i32, i32
  }
  func.func @transform_4(%arg0: i32) -> (i32, i32) {
    %c0_i32 = arith.constant 0 : i32
    %c0_i32_0 = arith.constant 0 : i32
    %c0_i32_1 = arith.constant 0 : i32
    return %c0_i32, %c0_i32_0 : i32, i32
  }
  func.func @transform_5(%arg0: i32) -> (i32, i32) {
    %c0_i32 = arith.constant 0 : i32
    %c0_i32_0 = arith.constant 0 : i32
    %c0_i32_1 = arith.constant 0 : i32
    return %c0_i32, %c0_i32_0 : i32, i32
  }
  func.func @transform_6(%arg0: i32) -> (i32, i32) {
    %c0_i32 = arith.constant 0 : i32
    %c0_i32_0 = arith.constant 0 : i32
    %c0_i32_1 = arith.constant 0 : i32
    return %c0_i32, %c0_i32_0 : i32, i32
  }
  func.func @transform_7(%arg0: i32) -> (i32, i32) {
    %c0_i32 = arith.constant 0 : i32
    %c0_i32_0 = arith.constant 0 : i32
    %c0_i32_1 = arith.constant 0 : i32
    return %c0_i32, %c0_i32_0 : i32, i32
  }
  func.func @transform_8(%arg0: i32) -> (i32, i32) {
    %c0_i32 = arith.constant 0 : i32
    %c0_i32_0 = arith.constant 0 : i32
    %c0_i32_1 = arith.constant 0 : i32
    return %c0_i32, %c0_i32_0 : i32, i32
  }
  func.func @transform_9(%arg0: i32) -> (i32, i32) {
    %c0_i32 = arith.constant 0 : i32
    %c0_i32_0 = arith.constant 0 : i32
    %c0_i32_1 = arith.constant 0 : i32
    return %c0_i32, %c0_i32_0 : i32, i32
  }
  func.func @transform_10(%arg0: i32) -> (i32, i32) {
    %c0_i32 = arith.constant 0 : i32
    %c0_i32_0 = arith.constant 0 : i32
    %c0_i32_1 = arith.constant 0 : i32
    return %c0_i32, %c0_i32_0 : i32, i32
  }
  func.func @transform_11(%arg0: i32) -> (i32, i32) {
    %c0_i32 = arith.constant 0 : i32
    %c0_i32_0 = arith.constant 0 : i32
    %c0_i32_1 = arith.constant 0 : i32
    return %c0_i32, %c0_i32_0 : i32, i32
  }
  func.func @transform_12(%arg0: i32) -> (i32, i32) {
    %c0_i32 = arith.constant 0 : i32
    %c0_i32_0 = arith.constant 0 : i32
    %c0_i32_1 = arith.constant 0 : i32
    return %c0_i32, %c0_i32_0 : i32, i32
  }
  func.func @transform_13(%arg0: i32) -> (i32, i32) {
    %c0_i32 = arith.constant 0 : i32
    %c0_i32_0 = arith.constant 0 : i32
    %c0_i32_1 = arith.constant 0 : i32
    return %c0_i32, %c0_i32_0 : i32, i32
  }
  func.func @transform_14(%arg0: i32) -> (i32, i32) {
    %c0_i32 = arith.constant 0 : i32
    %c0_i32_0 = arith.constant 0 : i32
    %c0_i32_1 = arith.constant 0 : i32
    return %c0_i32, %c0_i32_0 : i32, i32
  }
  func.func @transform_15(%arg0: i32) -> (i32, i32) {
    %c0_i32 = arith.constant 0 : i32
    %c0_i32_0 = arith.constant 0 : i32
    %c0_i32_1 = arith.constant 0 : i32
    return %c0_i32, %c0_i32_0 : i32, i32
  }
  func.func @transform_16(%arg0: i32) -> (i32, i32) {
    %c0_i32 = arith.constant 0 : i32
    %c0_i32_0 = arith.constant 0 : i32
    %c0_i32_1 = arith.constant 0 : i32
    return %c0_i32, %c0_i32_0 : i32, i32
  }
  func.func @transform_17(%arg0: i32) -> (i32, i32) {
    %c0_i32 = arith.constant 0 : i32
    %c0_i32_0 = arith.constant 0 : i32
    %c0_i32_1 = arith.constant 0 : i32
    return %c0_i32, %c0_i32_0 : i32, i32
  }
  func.func @transform_18(%arg0: i32) -> (i32, i32) {
    %c0_i32 = arith.constant 0 : i32
    %c0_i32_0 = arith.constant 0 : i32
    %c0_i32_1 = arith.constant 0 : i32
    return %c0_i32, %c0_i32_0 : i32, i32
  }
  func.func @transform_19(%arg0: i32) -> (i32, i32) {
    %c0_i32 = arith.constant 0 : i32
    %c0_i32_0 = arith.constant 0 : i32
    return %arg0, %c0_i32 : i32, i32
  }
}

</mosaic_0001>

<bundles_post_ra>
// kernel: tpu_custom_call.1
= control target key start
LH: loop header
LB: loop body
LE: loop exit
PB: predicated region body
PF: predicated region fallthrough
CT: control target
= control target key end

     0   :  { %s1615_s0 = inlined_call_operand.vmem [shape: f32[8,32], index: 0, kind: input, shape index: {}]   ;;  %s1616_s1 = inlined_call_operand.hbm [shape: f32[8,32], index: 1, kind: input, shape index: {}]   ;;  %s1617_s2 = inlined_call_operand.vmem [shape: f32[8,16,16], index: 2, kind: input, shape index: {}]   ;;  %s1618_s3 = inlined_call_operand.hbm [shape: f32[16,64], index: 3, kind: input, shape index: {}]   ;;  %s1619_s4 = inlined_call_operand.vmem [shape: f32[1,64], index: 4, kind: input, shape index: {}]   ;;  %s1620_s5 = inlined_call_operand.vmem [shape: f32[64,128], index: 5, kind: input, shape index: {}]   ;;  %s1621_s6 = inlined_call_operand.vmem [shape: f32[1,128], index: 6, kind: input, shape index: {}]   ;;  %s1622_s7 = inlined_call_operand.vmem [shape: f32[128,64], index: 7, kind: input, shape index: {}]   ;;  %s1623_s8 = inlined_call_operand.vmem [shape: f32[1,64], index: 8, kind: input, shape index: {}]   ;;  %s1624_s9 = inlined_call_operand.hbm [shape: f32[1,64], index: 9, kind: input, shape index: {}]   ;;  %s1625_s10 = inlined_call_operand.<no memory space> [shape: f32[1,1], index: 10, kind: input, shape index: {}]   ;;  %s1626_s11 = inlined_call_operand.vmem [shape: f32[32,64], index: 11, kind: input, shape index: {}]   ;;  %s1627_s12 = inlined_call_operand.hbm [shape: f32[32,64], index: 12, kind: input, shape index: {}]   ;;  %s1628_s13 = inlined_call_operand.hbm [shape: f32[16,64], index: 13, kind: input, shape index: {}]   ;;  %s1629_s14 = inlined_call_operand.vmem [shape: f32[1,64], index: 14, kind: input, shape index: {}]   ;;  %s1630_s15 = inlined_call_operand.vmem [shape: f32[64,32], index: 15, kind: input, shape index: {}]   ;;  %s1631_s16 = inlined_call_operand.vmem [shape: f32[1,32], index: 16, kind: input, shape index: {}]   ;;  %s1632_s17 = inlined_call_operand.vmem [shape: f32[1,32], index: 17, kind: input, shape index: {}]   ;;  %s1633_s19 = inlined_call_operand.vmem [shape: f32[8,1], index: 19, kind: output, shape index: {}]   ;;  %s1634_s18 = inlined_call_operand.<no memory space> [shape: f32[1,1], index: 18, kind: input, shape index: {}]  }
   0x1   :  { %1636 = sst [smem:[#allocation15_spill]] %s1615_s0  ;;  %v24_v0 = vstv %s1625_s10  ;;  %v26_v1 = vstv %s1634_s18 }
   0x2   :  { %1637 = sst [smem:[#allocation16_spill]] %s1616_s1  ;;  %25 = vst [vmem:[#allocation2] sm:$0x1] %v24_v0 }
   0x3   :  { %1638 = sst [smem:[#allocation17_spill]] %s1617_s2  ;;  %27 = vst [vmem:[#allocation3] sm:$0x1] %v26_v1 }
   0x4   :  { %1639 = sst [smem:[#allocation18_spill]] %s1618_s3 }
   0x5   :  { %28 = vsyncpa [#allocation5], 0 }
   0x6   :  { %29 = vsyncpa [#allocation7], 0  ;;  %s1640_s2 = sld [smem:[#allocation18_spill]] }
   0xc   :  { %s50_s23 = sshll.u32 %s1640_s2, 4  ;;  %s51_s23 = int_to_ptr.hbm [resolvable:$true] %s50_s23 }
   0xd   :  { %30 = vsyncpa [#allocation10], 0  ;;  %s1155_s24 = smov [#allocation6]   ;;  %s88_s10 = sshll.u32 %s1627_s12, 4  ;;  %s89_s10 = int_to_ptr.hbm [resolvable:$true] %s88_s10 }
   0xe   :  { %s52_s25 = sshll.u32 %s1155_s24, 4  ;;  %s1156_s27 = smov 128   ;;  %s53_s25 = int_to_ptr.vmem [resolvable:$true] %s52_s25 }
   0xf   :  { %s1157_s28 = smov 8   ;;  %s1158_s18 = smov [#allocation9]  }
  0x10   :  { %58 = dma.hbm_to_vmem [thread:$0]  %s51_s23, 256, %s53_s25, [#allocation7], %s1156_s27, %s1156_s27, %s1157_s28  }
  0x11   :  { %s90_s29 = sshll.u32 %s1158_s18, 4  ;;  %s1641_s20 = sld [smem:[#allocation16_spill]]  ;;  %s91_s29 = int_to_ptr.vmem [resolvable:$true] %s90_s29 }
  0x12   :  { %96 = dma.hbm_to_vmem [thread:$0]  %s89_s10, 512, %s91_s29, [#allocation10], %s1156_s27, %s1156_s27, %s1157_s28  }
  0x13   :  { %s74_s2 = sshll.u32 %s1624_s9, 4  ;;  %s1159_s24 = smov [#allocation4]   ;;  %s75_s2 = int_to_ptr.hbm [resolvable:$true] %s74_s2 }
  0x14   :  { %s40_s3 = sshll.u32 %s1159_s24, 4  ;;  %s1160_s12 = smov [#allocation8]   ;;  %s41_s3 = int_to_ptr.vmem [resolvable:$true] %s40_s3 }
  0x15   :  { %s76_s23 = sshll.u32 %s1160_s12, 4  ;;  %s101_s18 = sshll.u32 %s1628_s13, 4  ;;  %s77_s23 = int_to_ptr.vmem [resolvable:$true] %s76_s23  ;;  %s102_s18 = int_to_ptr.hbm [resolvable:$true] %s101_s18 }
  0x16   :  { %79 = dma.hbm_to_vmem [thread:$0]  %s75_s2, 16, %s77_s23, [#allocation7]  }
  0x17   :  { %s38_s21 = sshll.u32 %s1641_s20, 4  ;;  %s1161_s0 = smov [#allocation11]   ;;  %s39_s21 = int_to_ptr.hbm [resolvable:$true] %s38_s21 }
  0x18   :  { %43 = dma.hbm_to_vmem [thread:$0]  %s39_s21, 128, %s41_s3, [#allocation5]  }
  0x19   :  { %s103_s10 = sshll.u32 %s1161_s0, 4  ;;  %s104_s10 = int_to_ptr.vmem [resolvable:$true] %s103_s10 }
  0x1a   :  { %109 = dma.hbm_to_vmem [thread:$0]  %s102_s18, 256, %s104_s10, [#allocation10], %s1156_s27, %s1156_s27, %s1157_s28  }
  0x1b   :  { %1149 = dma.done.wait [#allocation5], 128  }
  0x1c   :  { %1150 = vsyncadd [#allocation5], 4294967168 }
  0x1d   :  { %1151 = dma.done.wait [#allocation7], 272  }
  0x1e   :  { %1152 = vsyncadd [#allocation7], 4294967024 }
  0x1f   :  { %1153 = dma.done.wait [#allocation10], 768  }
  0x20   :  { %1154 = vsyncadd [#allocation10], 4294966528  ;;  %v157_v2 = vld [vmem:[#allocation6 + $0x8] sm:$0xff]  ;;  %v156_v3 = vld [vmem:[#allocation6] sm:$0xff]  ;;  %s1642_s30 = sld [smem:[#allocation17_spill]]  ;;  %vm162_vm0 = vcmask 130048  }
  0x21   :  { %225 = vmatpush.msra.mxu0 %v157_v2  ;;  %v315_v15 = vld [vmem:[%s1620_s5 + $0x38] sm:$0xff]  ;;  %v314_v16 = vld [vmem:[%s1620_s5 + $0x30] sm:$0xff]  ;;  %v313_v18 = vld [vmem:[%s1620_s5 + $0x28] sm:$0xff]  ;;  %vm320_vm1 = vcmask 523264   ;;  %vm713_vm2 = vcmask 261120   ;;  %s1643_s24 = sld [smem:[#allocation15_spill]] }
  0x22   :  { %377 = vmatpush.msra.mxu1 %v315_v15  ;;  %v312_v19 = vld [vmem:[%s1620_s5 + $0x20] sm:$0xff]  ;;  %v311_v20 = vld [vmem:[%s1620_s5 + $0x18] sm:$0xff]  ;;  %v310_v22 = vld [vmem:[%s1620_s5 + $0x10] sm:$0xff]  ;;  %vm831_vm3 = vcmask 130112   ;;  %vm854_vm4 = vcmask 1041409   ;;  %vm856_vm5 = vcmask 1042434  }
  0x23   :  { %226 = vmatpush.msra.mxu0 %v156_v3  ;;  %v309_v23 = vld [vmem:[%s1620_s5 + $0x8] sm:$0xff]  ;;  %v308_v24 = vld [vmem:[%s1620_s5] sm:$0xff]  ;;  %vm858_vm6 = vcmask 1043459   ;;  %vm860_vm7 = vcmask 1044484   ;;  %vm862_vm8 = vcmask 1045509   ;;  %vm864_vm9 = vcmask 1046534  }
  0x24   :  { %378 = vmatpush.msra.mxu1 %v314_v16  ;;  %v1375_v28 = vld [vmem:[%s1619_s4] ss:$0 sm:$0xff]  ;;  %v475_v15 = vld [vmem:[%s1622_s7 + $0x48] sm:$0xff]  ;;  %vm866_vm10 = vcmask 1047559   ;;  %vm948_vm11 = vcmask 7168  }
  0x26   :  { %v140_v4 = vld [vmem:[%s1642_s30] sm:$0xff]  ;;  %v141_v5 = vld [vmem:[%s1642_s30 + $0x8] sm:$0xff]  ;;  %v142_v6 = vld [vmem:[%s1642_s30 + $0x10] sm:$0xff]  ;;  %379 = vmatpush.msra.mxu1 %v313_v18 }
  0x27   :  { %957 = vmatmul.msk.f32.vlgmr.msra.gmra.mxu0 %vm162_vm0, %v140_v4  ;;  %v143_v7 = vld [vmem:[%s1642_s30 + $0x18] sm:$0xff]  ;;  %v144_v8 = vld [vmem:[%s1642_s30 + $0x20] sm:$0xff]  ;;  %v145_v9 = vld [vmem:[%s1642_s30 + $0x28] sm:$0xff] }
  0x28   :  { %v146_v10 = vld [vmem:[%s1642_s30 + $0x30] sm:$0xff]  ;;  %v147_v11 = vld [vmem:[%s1642_s30 + $0x38] sm:$0xff]  ;;  %v148_v12 = vld [vmem:[%s1642_s30 + $0x40] sm:$0xff]  ;;  %380 = vmatpush.msra.mxu1 %v312_v19 }
  0x29   :  { %v149_v13 = vld [vmem:[%s1642_s30 + $0x48] sm:$0xff]  ;;  %v150_v14 = vld [vmem:[%s1642_s30 + $0x50] sm:$0xff]  ;;  %v151_v17 = vld [vmem:[%s1642_s30 + $0x58] sm:$0xff] }
  0x2a   :  { %v152_v21 = vld [vmem:[%s1642_s30 + $0x60] sm:$0xff]  ;;  %381 = vmatpush.msra.mxu1 %v311_v20  ;;  %v153_v25 = vld [vmem:[%s1642_s30 + $0x68] sm:$0xff]  ;;  %v154_v26 = vld [vmem:[%s1642_s30 + $0x70] sm:$0xff] }
  0x2b   :  { %v155_v27 = vld [vmem:[%s1642_s30 + $0x78] sm:$0xff]  ;;  %v474_v18 = vld [vmem:[%s1622_s7 + $0x40] sm:$0xff] }
  0x2c   :  { %382 = vmatpush.msra.mxu1 %v310_v22  ;;  %v481_v4 = vld [vmem:[%s1622_s7 + $0x78] sm:$0xff]  ;;  %v472_v22 = vld [vmem:[%s1622_s7 + $0x30] sm:$0xff] }
  0x2d   :  { %486 = vmatpush.msra.mxu2 %v481_v4  ;;  %993 = vmatpush.msra.mxu3 %v481_v4  ;;  %v473_v20 = vld [vmem:[%s1622_s7 + $0x38] sm:$0xff] }
  0x2e   :  { %383 = vmatpush.msra.mxu1 %v309_v23  ;;  %v471_v23 = vld [vmem:[%s1622_s7 + $0x28] sm:$0xff] }
  0x2f   :  { %958 = vmatmul.msk.f32.gmra.mxu0 %vm162_vm0, %v141_v5 }
  0x30   :  { %384 = vmatpush.msra.mxu1 %v308_v24  ;;  %v470_v24 = vld [vmem:[%s1622_s7 + $0x20] sm:$0xff] }
  0x37   :  { %959 = vmatmul.msk.f32.gmra.mxu0 %vm162_vm0, %v142_v6  ;;  %v480_v6 = vld [vmem:[%s1622_s7 + $0x70] sm:$0xff] }
  0x38   :  { %487 = vmatpush.msra.mxu2 %v480_v6  ;;  %994 = vmatpush.msra.mxu3 %v480_v6 }
  0x3f   :  { %960 = vmatmul.msk.f32.gmra.mxu0 %vm162_vm0, %v143_v7  ;;  %v479_v7 = vld [vmem:[%s1622_s7 + $0x68] sm:$0xff] }
  0x40   :  { %488 = vmatpush.msra.mxu2 %v479_v7  ;;  %995 = vmatpush.msra.mxu3 %v479_v7 }
  0x47   :  { %961 = vmatmul.msk.f32.gmra.mxu0 %vm162_vm0, %v144_v8 }
  0x4f   :  { %962 = vmatmul.msk.f32.gmra.mxu0 %vm162_vm0, %v145_v9 }
  0x57   :  { %963 = vmatmul.msk.f32.gmra.mxu0 %vm162_vm0, %v146_v10  ;;  %v478_v10 = vld [vmem:[%s1622_s7 + $0x60] sm:$0xff] }
  0x58   :  { %489 = vmatpush.msra.mxu2 %v478_v10  ;;  %996 = vmatpush.msra.mxu3 %v478_v10 }
  0x5f   :  { %964 = vmatmul.msk.f32.gmra.mxu0 %vm162_vm0, %v147_v11 }
  0x67   :  { %965 = vmatmul.msk.f32.gmra.mxu0 %vm162_vm0, %v148_v12  ;;  %v477_v12 = vld [vmem:[%s1622_s7 + $0x58] sm:$0xff] }
  0x68   :  { %490 = vmatpush.msra.mxu2 %v477_v12  ;;  %997 = vmatpush.msra.mxu3 %v477_v12 }
  0x6f   :  { %966 = vmatmul.msk.f32.gmra.mxu0 %vm162_vm0, %v149_v13 }
  0x77   :  { %967 = vmatmul.msk.f32.gmra.mxu0 %vm162_vm0, %v150_v14  ;;  %v476_v14 = vld [vmem:[%s1622_s7 + $0x50] sm:$0xff] }
  0x78   :  { %491 = vmatpush.msra.mxu2 %v476_v14  ;;  %998 = vmatpush.msra.mxu3 %v476_v14 }
  0x7a   :  { %492 = vmatpush.msra.mxu2 %v475_v15  ;;  %999 = vmatpush.msra.mxu3 %v475_v15 }
  0x7c   :  { %493 = vmatpush.msra.mxu2 %v474_v18  ;;  %1000 = vmatpush.msra.mxu3 %v474_v18 }
  0x7e   :  { %494 = vmatpush.msra.mxu2 %v473_v20  ;;  %1001 = vmatpush.msra.mxu3 %v473_v20 }
  0x7f   :  { %968 = vmatmul.msk.f32.gmra.mxu0 %vm162_vm0, %v151_v17 }
  0x80   :  { %495 = vmatpush.msra.mxu2 %v472_v22  ;;  %1002 = vmatpush.msra.mxu3 %v472_v22 }
  0x82   :  { %496 = vmatpush.msra.mxu2 %v471_v23  ;;  %1003 = vmatpush.msra.mxu3 %v471_v23 }
  0x84   :  { %497 = vmatpush.msra.mxu2 %v470_v24  ;;  %1004 = vmatpush.msra.mxu3 %v470_v24 }
  0x87   :  { %969 = vmatmul.msk.f32.gmra.mxu0 %vm162_vm0, %v152_v21 }
  0x8f   :  { %970 = vmatmul.msk.f32.gmra.mxu0 %vm162_vm0, %v153_v25 }
  0x97   :  { %971 = vmatmul.msk.f32.gmra.mxu0 %vm162_vm0, %v154_v26 }
  0x9f   :  { %972 = vmatmul.msk.f32.gmra.mxu0 %vm162_vm0, %v155_v27 }
  0xa4   :  { %v228_v29 = vpop.f32.mrf.mxu0 }
  0xa5   :  { %v229_v30 = vadd.f32 %v1375_v28, %v228_v29  ;;  %v469_v29 = vld [vmem:[%s1622_s7 + $0x18] sm:$0xff] }
  0xa6   :  { %498 = vmatpush.msra.mxu2 %v469_v29  ;;  %1005 = vmatpush.msra.mxu3 %v469_v29 }
  0xa7   :  { %v276_v31 = vmul.f32 0.01, %v229_v30 }
  0xa9   :  { %v292_v32 = vmax.f32 %v229_v30, %v276_v31  ;;  %v468_v31 = vld [vmem:[%s1622_s7 + $0x10] sm:$0xff] }
  0xaa   :  { %499 = vmatpush.msra.mxu2 %v468_v31  ;;  %1006 = vmatpush.msra.mxu3 %v468_v31 }
  0xab   :  { %973 = vmatmul.msk.f32.vlgmr.msra.gmra.mxu1 %vm320_vm1, %v292_v32  ;;  %v467_v32 = vld [vmem:[%s1622_s7 + $0x8] sm:$0xff] }
  0xac   :  { %v231_v33 = vpop.f32.mrf.mxu0  ;;  %500 = vmatpush.msra.mxu2 %v467_v32  ;;  %1007 = vmatpush.msra.mxu3 %v467_v32 }
  0xad   :  { %v232_v34 = vadd.f32 %v1375_v28, %v231_v33  ;;  %v466_v33 = vld [vmem:[%s1622_s7] sm:$0xff] }
  0xae   :  { %501 = vmatpush.msra.mxu2 %v466_v33  ;;  %1008 = vmatpush.msra.mxu3 %v466_v33 }
  0xaf   :  { %v277_v35 = vmul.f32 0.01, %v232_v34 }
  0xb1   :  { %v293_v36 = vmax.f32 %v232_v34, %v277_v35 }
  0xb3   :  { %974 = vmatmul.msk.f32.gmra.mxu1 %vm320_vm1, %v293_v36 }
  0xb4   :  { %v234_v37 = vpop.f32.mrf.mxu0 }
  0xb5   :  { %v235_v38 = vadd.f32 %v1375_v28, %v234_v37 }
  0xb7   :  { %v278_v39 = vmul.f32 0.01, %v235_v38 }
  0xb9   :  { %v294_v40 = vmax.f32 %v235_v38, %v278_v39 }
  0xbb   :  { %975 = vmatmul.msk.f32.gmra.mxu1 %vm320_vm1, %v294_v40 }
  0xbc   :  { %v237_v41 = vpop.f32.mrf.mxu0 }
  0xbd   :  { %v238_v42 = vadd.f32 %v1375_v28, %v237_v41 }
  0xbf   :  { %v279_v43 = vmul.f32 0.01, %v238_v42 }
  0xc1   :  { %v295_v44 = vmax.f32 %v238_v42, %v279_v43 }
  0xc3   :  { %976 = vmatmul.msk.f32.gmra.mxu1 %vm320_vm1, %v295_v44 }
  0xc4   :  { %v240_v45 = vpop.f32.mrf.mxu0 }
  0xc5   :  { %v241_v46 = vadd.f32 %v1375_v28, %v240_v45 }
  0xc7   :  { %v280_v47 = vmul.f32 0.01, %v241_v46 }
  0xc9   :  { %v296_v48 = vmax.f32 %v241_v46, %v280_v47  ;;  %v1460_v46 = vld [vmem:[%s1621_s6] ss:$0 sm:$0xff] }
  0xcb   :  { %977 = vmatmul.msk.f32.gmra.mxu1 %vm320_vm1, %v296_v48 }
  0xcc   :  { %v243_v49 = vpop.f32.mrf.mxu0 }
  0xcd   :  { %v244_v50 = vadd.f32 %v1375_v28, %v243_v49 }
  0xcf   :  { %v281_v51 = vmul.f32 0.01, %v244_v50 }
  0xd1   :  { %v297_v52 = vmax.f32 %v244_v50, %v281_v51 }
  0xd3   :  { %978 = vmatmul.msk.f32.gmra.mxu1 %vm320_vm1, %v297_v52 }
  0xd4   :  { %v246_v53 = vpop.f32.mrf.mxu0 }
  0xd5   :  { %v247_v54 = vadd.f32 %v1375_v28, %v246_v53 }
  0xd7   :  { %v282_v55 = vmul.f32 0.01, %v247_v54 }
  0xd9   :  { %v298_v56 = vmax.f32 %v247_v54, %v282_v55 }
  0xdb   :  { %979 = vmatmul.msk.f32.gmra.mxu1 %vm320_vm1, %v298_v56 }
  0xdc   :  { %v249_v57 = vpop.f32.mrf.mxu0 }
  0xdd   :  { %v250_v58 = vadd.f32 %v1375_v28, %v249_v57 }
  0xdf   :  { %v283_v59 = vmul.f32 0.01, %v250_v58 }
  0xe1   :  { %v299_v60 = vmax.f32 %v250_v58, %v283_v59 }
  0xe3   :  { %980 = vmatmul.msk.f32.gmra.mxu1 %vm320_vm1, %v299_v60 }
  0xe4   :  { %v252_v61 = vpop.f32.mrf.mxu0 }
  0xe5   :  { %v253_v62 = vadd.f32 %v1375_v28, %v252_v61 }
  0xe7   :  { %v284_v63 = vmul.f32 0.01, %v253_v62 }
  0xe9   :  { %v300_v0 = vmax.f32 %v253_v62, %v284_v63 }
  0xeb   :  { %981 = vmatmul.msk.f32.gmra.mxu1 %vm320_vm1, %v300_v0 }
  0xec   :  { %v255_v1 = vpop.f32.mrf.mxu0 }
  0xed   :  { %v256_v2 = vadd.f32 %v1375_v28, %v255_v1 }
  0xef   :  { %v285_v3 = vmul.f32 0.01, %v256_v2 }
  0xf1   :  { %v301_v5 = vmax.f32 %v256_v2, %v285_v3 }
  0xf3   :  { %982 = vmatmul.msk.f32.gmra.mxu1 %vm320_vm1, %v301_v5 }
  0xf4   :  { %v258_v8 = vpop.f32.mrf.mxu0 }
  0xf5   :  { %v259_v9 = vadd.f32 %v1375_v28, %v258_v8 }
  0xf7   :  { %v286_v11 = vmul.f32 0.01, %v259_v9 }
  0xf9   :  { %v302_v13 = vmax.f32 %v259_v9, %v286_v11 }
  0xfb   :  { %983 = vmatmul.msk.f32.gmra.mxu1 %vm320_vm1, %v302_v13 }
  0xfc   :  { %v261_v16 = vpop.f32.mrf.mxu0 }
  0xfd   :  { %v262_v17 = vadd.f32 %v1375_v28, %v261_v16 }
  0xff   :  { %v287_v19 = vmul.f32 0.01, %v262_v17 }
 0x101   :  { %v303_v21 = vmax.f32 %v262_v17, %v287_v19 }
 0x103   :  { %984 = vmatmul.msk.f32.gmra.mxu1 %vm320_vm1, %v303_v21 }
 0x104   :  { %v264_v25 = vpop.f32.mrf.mxu0 }
 0x105   :  { %v265_v26 = vadd.f32 %v1375_v28, %v264_v25 }
 0x107   :  { %v288_v27 = vmul.f32 0.01, %v265_v26 }
 0x109   :  { %v304_v30 = vmax.f32 %v265_v26, %v288_v27 }
 0x10b   :  { %985 = vmatmul.msk.f32.gmra.mxu1 %vm320_vm1, %v304_v30 }
 0x10c   :  { %v267_v34 = vpop.f32.mrf.mxu0 }
 0x10d   :  { %v268_v35 = vadd.f32 %v1375_v28, %v267_v34 }
 0x10f   :  { %v289_v36 = vmul.f32 0.01, %v268_v35 }
 0x111   :  { %v305_v37 = vmax.f32 %v268_v35, %v289_v36 }
 0x113   :  { %986 = vmatmul.msk.f32.gmra.mxu1 %vm320_vm1, %v305_v37 }
 0x114   :  { %v270_v38 = vpop.f32.mrf.mxu0 }
 0x115   :  { %v271_v39 = vadd.f32 %v1375_v28, %v270_v38 }
 0x117   :  { %v290_v40 = vmul.f32 0.01, %v271_v39 }
 0x119   :  { %v306_v41 = vmax.f32 %v271_v39, %v290_v40 }
 0x11b   :  { %987 = vmatmul.msk.f32.gmra.mxu1 %vm320_vm1, %v306_v41 }
 0x11c   :  { %v273_v42 = vpop.f32.mrf.mxu0 }
 0x11d   :  { %v274_v43 = vadd.f32 %v1375_v28, %v273_v42 }
 0x11f   :  { %v291_v44 = vmul.f32 0.01, %v274_v43 }
 0x121   :  { %v307_v45 = vmax.f32 %v274_v43, %v291_v44 }
 0x123   :  { %988 = vmatmul.msk.f32.gmra.mxu1 %vm320_vm1, %v307_v45 }
 0x128   :  { %v386_v47 = vpop.f32.mrf.mxu1 }
 0x129   :  { %v387_v48 = vadd.f32 %v1460_v46, %v386_v47 }
 0x12b   :  { %v434_v49 = vmul.f32 0.01, %v387_v48 }
 0x12d   :  { %v450_v50 = vmax.f32 %v387_v48, %v434_v49  ;;  %v1481_v48 = vld [vmem:[%s1623_s8] ss:$0 sm:$0xff] }
 0x12f   :  { %502 = vmatmul.f32.vlgmr.msra.gmra.mxu2 %v450_v50 }
 0x130   :  { %v389_v51 = vpop.f32.mrf.mxu1 }
 0x131   :  { %v390_v52 = vadd.f32 %v1460_v46, %v389_v51 }
 0x133   :  { %v435_v53 = vmul.f32 0.01, %v390_v52 }
 0x135   :  { %v451_v28 = vmax.f32 %v390_v52, %v435_v53  ;;  %v1484_v52 = vld [vmem:[#allocation8] ss:$0 sm:$0xff] }
 0x137   :  { %505 = vmatmul.f32.gmra.mxu2 %v451_v28 }
 0x138   :  { %v392_v54 = vpop.f32.mrf.mxu1 }
 0x139   :  { %v393_v55 = vadd.f32 %v1460_v46, %v392_v54 }
 0x13b   :  { %v436_v56 = vmul.f32 0.01, %v393_v55 }
 0x13d   :  { %v452_v57 = vmax.f32 %v393_v55, %v436_v56 }
 0x13f   :  { %508 = vmatmul.f32.gmra.mxu2 %v452_v57 }
 0x140   :  { %v395_v58 = vpop.f32.mrf.mxu1 }
 0x141   :  { %v396_v59 = vadd.f32 %v1460_v46, %v395_v58 }
 0x143   :  { %v437_v60 = vmul.f32 0.01, %v396_v59 }
 0x145   :  { %v453_v61 = vmax.f32 %v396_v59, %v437_v60 }
 0x147   :  { %511 = vmatmul.f32.gmra.mxu2 %v453_v61 }
 0x148   :  { %v398_v62 = vpop.f32.mrf.mxu1 }
 0x149   :  { %v399_v63 = vadd.f32 %v1460_v46, %v398_v62 }
 0x14b   :  { %v438_v0 = vmul.f32 0.01, %v399_v63 }
 0x14d   :  { %v454_v1 = vmax.f32 %v399_v63, %v438_v0 }
 0x14f   :  { %514 = vmatmul.f32.gmra.mxu2 %v454_v1 }
 0x150   :  { %v401_v2 = vpop.f32.mrf.mxu1 }
 0x151   :  { %v402_v3 = vadd.f32 %v1460_v46, %v401_v2 }
 0x153   :  { %v439_v4 = vmul.f32 0.01, %v402_v3 }
 0x155   :  { %v455_v5 = vmax.f32 %v402_v3, %v439_v4 }
 0x157   :  { %517 = vmatmul.f32.gmra.mxu2 %v455_v5 }
 0x158   :  { %v404_v6 = vpop.f32.mrf.mxu1 }
 0x159   :  { %v405_v7 = vadd.f32 %v1460_v46, %v404_v6 }
 0x15b   :  { %v440_v8 = vmul.f32 0.01, %v405_v7 }
 0x15d   :  { %v456_v9 = vmax.f32 %v405_v7, %v440_v8 }
 0x15f   :  { %520 = vmatmul.f32.gmra.mxu2 %v456_v9 }
 0x160   :  { %v407_v10 = vpop.f32.mrf.mxu1 }
 0x161   :  { %v408_v11 = vadd.f32 %v1460_v46, %v407_v10 }
 0x163   :  { %v441_v12 = vmul.f32 0.01, %v408_v11 }
 0x165   :  { %v457_v13 = vmax.f32 %v408_v11, %v441_v12 }
 0x167   :  { %523 = vmatmul.f32.gmra.mxu2 %v457_v13 }
 0x168   :  { %v410_v14 = vpop.f32.mrf.mxu1 }
 0x169   :  { %v411_v15 = vadd.f32 %v1460_v46, %v410_v14 }
 0x16b   :  { %v442_v16 = vmul.f32 0.01, %v411_v15 }
 0x16d   :  { %v458_v17 = vmax.f32 %v411_v15, %v442_v16 }
 0x16f   :  { %526 = vmatmul.f32.gmra.mxu2 %v458_v17 }
 0x170   :  { %v413_v18 = vpop.f32.mrf.mxu1 }
 0x171   :  { %v414_v19 = vadd.f32 %v1460_v46, %v413_v18 }
 0x173   :  { %v443_v20 = vmul.f32 0.01, %v414_v19 }
 0x175   :  { %v459_v21 = vmax.f32 %v414_v19, %v443_v20 }
 0x177   :  { %529 = vmatmul.f32.gmra.mxu2 %v459_v21 }
 0x178   :  { %v416_v22 = vpop.f32.mrf.mxu1 }
 0x179   :  { %v417_v23 = vadd.f32 %v1460_v46, %v416_v22 }
 0x17b   :  { %v444_v24 = vmul.f32 0.01, %v417_v23 }
 0x17d   :  { %v460_v25 = vmax.f32 %v417_v23, %v444_v24 }
 0x17f   :  { %532 = vmatmul.f32.gmra.mxu2 %v460_v25 }
 0x180   :  { %v419_v26 = vpop.f32.mrf.mxu1 }
 0x181   :  { %v420_v27 = vadd.f32 %v1460_v46, %v419_v26 }
 0x183   :  { %v445_v29 = vmul.f32 0.01, %v420_v27 }
 0x185   :  { %v461_v30 = vmax.f32 %v420_v27, %v445_v29 }
 0x187   :  { %535 = vmatmul.f32.gmra.mxu2 %v461_v30 }
 0x188   :  { %v422_v31 = vpop.f32.mrf.mxu1 }
 0x189   :  { %v423_v32 = vadd.f32 %v1460_v46, %v422_v31 }
 0x18b   :  { %v446_v33 = vmul.f32 0.01, %v423_v32 }
 0x18d   :  { %v462_v34 = vmax.f32 %v423_v32, %v446_v33 }
 0x18f   :  { %538 = vmatmul.f32.vlgmr.msra.gmra.mxu3 %v462_v34 }
 0x190   :  { %v425_v35 = vpop.f32.mrf.mxu1 }
 0x191   :  { %v426_v36 = vadd.f32 %v1460_v46, %v425_v35 }
 0x193   :  { %v447_v37 = vmul.f32 0.01, %v426_v36 }
 0x195   :  { %v463_v38 = vmax.f32 %v426_v36, %v447_v37 }
 0x197   :  { %541 = vmatmul.f32.gmra.mxu3 %v463_v38 }
 0x198   :  { %v428_v39 = vpop.f32.mrf.mxu1 }
 0x199   :  { %v429_v40 = vadd.f32 %v1460_v46, %v428_v39 }
 0x19b   :  { %v448_v41 = vmul.f32 0.01, %v429_v40 }
 0x19d   :  { %v464_v42 = vmax.f32 %v429_v40, %v448_v41 }
 0x19f   :  { %544 = vmatmul.f32.gmra.mxu3 %v464_v42 }
 0x1a0   :  { %v431_v43 = vpop.f32.mrf.mxu1 }
 0x1a1   :  { %v432_v44 = vadd.f32 %v1460_v46, %v431_v43 }
 0x1a3   :  { %v449_v45 = vmul.f32 0.01, %v432_v44 }
 0x1a5   :  { %v465_v47 = vmax.f32 %v432_v44, %v449_v45 }
 0x1a7   :  { %547 = vmatmul.f32.gmra.mxu3 %v465_v47 }
 0x1b2   :  { %v503_v49 = vpop.f32.mrf.mxu2 }
 0x1b3   :  { %v504_v50 = vadd.f32 %v1481_v48, %v503_v49 }
 0x1b5   :  { %v551_v51 = vmul.f32 0.01, %v504_v50 }
 0x1b7   :  { %v567_v53 = vmax.f32 %v504_v50, %v551_v51 }
 0x1b9   :  { %v587_v28 = vmul.f32 %v1484_v52, %v567_v53 }
 0x1ba   :  { %v506_v54 = vpop.f32.mrf.mxu2 }
 0x1bb   :  { %v507_v46 = vadd.f32 %v1481_v48, %v506_v54  ;;  %v603_v55 = vsel %vm320_vm1, %v587_v28, 0.0 }
 0x1bc   :  { %604 = vadd.xlane.f32.xlu0 %v603_v55 }
 0x1bd   :  { %v552_v56 = vmul.f32 0.01, %v507_v46 }
 0x1bf   :  { %v568_v57 = vmax.f32 %v507_v46, %v552_v56 }
 0x1c1   :  { %v588_v58 = vmul.f32 %v1484_v52, %v568_v57 }
 0x1c2   :  { %v509_v59 = vpop.f32.mrf.mxu2 }
 0x1c3   :  { %v510_v60 = vadd.f32 %v1481_v48, %v509_v59  ;;  %v606_v61 = vsel %vm320_vm1, %v588_v58, 0.0 }
 0x1c4   :  { %607 = vadd.xlane.f32.xlu0 %v606_v61 }
 0x1c5   :  { %v553_v62 = vmul.f32 0.01, %v510_v60 }
 0x1c7   :  { %v569_v63 = vmax.f32 %v510_v60, %v553_v62 }
 0x1c9   :  { %v589_v0 = vmul.f32 %v1484_v52, %v569_v63 }
 0x1ca   :  { %v512_v1 = vpop.f32.mrf.mxu2 }
 0x1cb   :  { %v513_v2 = vadd.f32 %v1481_v48, %v512_v1  ;;  %v609_v3 = vsel %vm320_vm1, %v589_v0, 0.0 }
 0x1cc   :  { %610 = vadd.xlane.f32.xlu1 %v609_v3 }
 0x1cd   :  { %v554_v4 = vmul.f32 0.01, %v513_v2 }
 0x1cf   :  { %v570_v5 = vmax.f32 %v513_v2, %v554_v4  ;;  %v1162_v2 = vmov 0  }
 0x1d0   :  { %1017 = vset.pattern.permute.xlu1 %v1162_v2  ;;  %1018 = vset.pattern.permute.xlu2 %v1162_v2 }
 0x1d1   :  { %v590_v6 = vmul.f32 %v1484_v52, %v570_v5  ;;  %1019 = vset.pattern.permute.xlu0 %v1162_v2 }
 0x1d2   :  { %v515_v7 = vpop.f32.mrf.mxu2 }
 0x1d3   :  { %v516_v8 = vadd.f32 %v1481_v48, %v515_v7  ;;  %v612_v9 = vsel %vm320_vm1, %v590_v6, 0.0 }
 0x1d4   :  { %613 = vadd.xlane.f32.xlu1 %v612_v9 }
 0x1d5   :  { %v555_v10 = vmul.f32 0.01, %v516_v8 }
 0x1d7   :  { %v571_v11 = vmax.f32 %v516_v8, %v555_v10 }
 0x1d9   :  { %v591_v12 = vmul.f32 %v1484_v52, %v571_v11 }
 0x1da   :  { %v518_v13 = vpop.f32.mrf.mxu2 }
 0x1db   :  { %v519_v14 = vadd.f32 %v1481_v48, %v518_v13  ;;  %v615_v15 = vsel %vm320_vm1, %v591_v12, 0.0 }
 0x1dc   :  { %616 = vadd.xlane.f32.xlu2 %v615_v15 }
 0x1dd   :  { %v556_v16 = vmul.f32 0.01, %v519_v14 }
 0x1df   :  { %v572_v17 = vmax.f32 %v519_v14, %v556_v16 }
 0x1e1   :  { %v592_v18 = vmul.f32 %v1484_v52, %v572_v17  ;;  %v1531_v17 = vld [vmem:[#allocation2] ss:$0 sm:$0xff] }
 0x1e2   :  { %v521_v19 = vpop.f32.mrf.mxu2 }
 0x1e3   :  { %v522_v20 = vadd.f32 %v1481_v48, %v521_v19  ;;  %v618_v21 = vsel %vm320_vm1, %v592_v18, 0.0 }
 0x1e4   :  { %619 = vadd.xlane.f32.xlu2 %v618_v21 }
 0x1e5   :  { %v557_v22 = vmul.f32 0.01, %v522_v20 }
 0x1e7   :  { %v573_v23 = vmax.f32 %v522_v20, %v557_v22 }
 0x1e9   :  { %v593_v24 = vmul.f32 %v1484_v52, %v573_v23 }
 0x1ea   :  { %v524_v25 = vpop.f32.mrf.mxu2 }
 0x1eb   :  { %v525_v26 = vadd.f32 %v1481_v48, %v524_v25  ;;  %v621_v27 = vsel %vm320_vm1, %v593_v24, 0.0 }
 0x1ec   :  { %622 = vadd.xlane.f32.xlu0 %v621_v27 }
 0x1ed   :  { %v558_v29 = vmul.f32 0.01, %v525_v26 }
 0x1ef   :  { %v574_v30 = vmax.f32 %v525_v26, %v558_v29 }
 0x1f1   :  { %v594_v31 = vmul.f32 %v1484_v52, %v574_v30 }
 0x1f2   :  { %v527_v32 = vpop.f32.mrf.mxu2 }
 0x1f3   :  { %v528_v33 = vadd.f32 %v1481_v48, %v527_v32  ;;  %v624_v34 = vsel %vm320_vm1, %v594_v31, 0.0 }
 0x1f4   :  { %625 = vadd.xlane.f32.xlu1 %v624_v34 }
 0x1f5   :  { %v559_v35 = vmul.f32 0.01, %v528_v33 }
 0x1f7   :  { %v575_v36 = vmax.f32 %v528_v33, %v559_v35 }
 0x1f9   :  { %v595_v37 = vmul.f32 %v1484_v52, %v575_v36 }
 0x1fa   :  { %v530_v38 = vpop.f32.mrf.mxu2 }
 0x1fb   :  { %v531_v39 = vadd.f32 %v1481_v48, %v530_v38  ;;  %v627_v40 = vsel %vm320_vm1, %v595_v37, 0.0 }
 0x1fc   :  { %628 = vadd.xlane.f32.xlu2 %v627_v40 }
 0x1fd   :  { %v560_v41 = vmul.f32 0.01, %v531_v39 }
 0x1ff   :  { %v576_v42 = vmax.f32 %v531_v39, %v560_v41 }
 0x201   :  { %v596_v43 = vmul.f32 %v1484_v52, %v576_v42 }
 0x202   :  { %v533_v44 = vpop.f32.mrf.mxu2 }
 0x203   :  { %v534_v45 = vadd.f32 %v1481_v48, %v533_v44  ;;  %v630_v47 = vsel %vm320_vm1, %v596_v43, 0.0 }
 0x204   :  { %631 = vadd.xlane.f32.xlu0 %v630_v47 }
 0x205   :  { %v561_v49 = vmul.f32 0.01, %v534_v45 }
 0x207   :  { %v577_v50 = vmax.f32 %v534_v45, %v561_v49 }
 0x209   :  { %v597_v51 = vmul.f32 %v1484_v52, %v577_v50 }
 0x20a   :  { %v536_v53 = vpop.f32.mrf.mxu2 }
 0x20b   :  { %v537_v28 = vadd.f32 %v1481_v48, %v536_v53  ;;  %v633_v54 = vsel %vm320_vm1, %v597_v51, 0.0 }
 0x20c   :  { %634 = vadd.xlane.f32.xlu1 %v633_v54 }
 0x20d   :  { %v562_v46 = vmul.f32 0.01, %v537_v28 }
 0x20f   :  { %v578_v55 = vmax.f32 %v537_v28, %v562_v46 }
 0x211   :  { %v598_v56 = vmul.f32 %v1484_v52, %v578_v55 }
 0x212   :  { %v539_v57 = vpop.f32.mrf.mxu3 }
 0x213   :  { %v540_v58 = vadd.f32 %v1481_v48, %v539_v57  ;;  %v636_v59 = vsel %vm320_vm1, %v598_v56, 0.0 }
 0x214   :  { %637 = vadd.xlane.f32.xlu2 %v636_v59 }
 0x215   :  { %v563_v60 = vmul.f32 0.01, %v540_v58 }
 0x217   :  { %v579_v61 = vmax.f32 %v540_v58, %v563_v60 }
 0x219   :  { %v599_v62 = vmul.f32 %v1484_v52, %v579_v61 }
 0x21a   :  { %v542_v63 = vpop.f32.mrf.mxu3 }
 0x21b   :  { %v543_v0 = vadd.f32 %v1481_v48, %v542_v63  ;;  %v639_v1 = vsel %vm320_vm1, %v599_v62, 0.0 }
 0x21c   :  { %640 = vadd.xlane.f32.xlu0 %v639_v1 }
 0x21d   :  { %v564_v3 = vmul.f32 0.01, %v543_v0 }
 0x21f   :  { %v580_v4 = vmax.f32 %v543_v0, %v564_v3 }
 0x221   :  { %v600_v5 = vmul.f32 %v1484_v52, %v580_v4 }
 0x222   :  { %v545_v6 = vpop.f32.mrf.mxu3 }
 0x223   :  { %v546_v7 = vadd.f32 %v1481_v48, %v545_v6  ;;  %v642_v8 = vsel %vm320_vm1, %v600_v5, 0.0 }
 0x224   :  { %643 = vadd.xlane.f32.xlu1 %v642_v8 }
 0x225   :  { %v565_v9 = vmul.f32 0.01, %v546_v7 }
 0x227   :  { %v581_v10 = vmax.f32 %v546_v7, %v565_v9 }
 0x229   :  { %v601_v11 = vmul.f32 %v1484_v52, %v581_v10 }
 0x22a   :  { %v548_v12 = vpop.f32.mrf.mxu3 }
 0x22b   :  { %v549_v13 = vadd.f32 %v1481_v48, %v548_v12  ;;  %v645_v14 = vsel %vm320_vm1, %v601_v11, 0.0 }
 0x22c   :  { %646 = vadd.xlane.f32.xlu2 %v645_v14 }
 0x22d   :  { %v566_v15 = vmul.f32 0.01, %v549_v13 }
 0x22f   :  { %v582_v16 = vmax.f32 %v549_v13, %v566_v15  ;;  %v605_v18 = vpop.xlane.xlu0 %604 }
 0x230   :  { %v655_v20 = vadd.f32 %v1531_v17, %v605_v18 }
 0x231   :  { %v602_v19 = vmul.f32 %v1484_v52, %v582_v16 }
 0x232   :  { %v671_v22 = vmul.f32 0.01, %v655_v20 }
 0x233   :  { %v648_v21 = vsel %vm320_vm1, %v602_v19, 0.0 }
 0x234   :  { %649 = vadd.xlane.f32.xlu0 %v648_v21  ;;  %v687_v48 = vmax.f32 %v655_v20, %v671_v22  ;;  %v712_v21 = vld [vmem:[#allocation9 + $0x18] sm:$0xff]  ;;  %v711_v22 = vld [vmem:[#allocation9 + $0x10] sm:$0xff] }
 0x235   :  { %729 = vmatpush.msrb.mxu3 %v712_v21  ;;  %v903_v21 = vld [vmem:[%s1630_s15 + $0x28] sm:$0xff] }
 0x237   :  { %v608_v23 = vpop.xlane.xlu0 %607  ;;  %730 = vmatpush.msrb.mxu3 %v711_v22  ;;  %v902_v22 = vld [vmem:[%s1630_s15 + $0x20] sm:$0xff] }
 0x238   :  { %v656_v24 = vadd.f32 %v1531_v17, %v608_v23  ;;  %v710_v23 = vld [vmem:[#allocation9 + $0x8] sm:$0xff] }
 0x239   :  { %731 = vmatpush.msrb.mxu3 %v710_v23  ;;  %v901_v23 = vld [vmem:[%s1630_s15 + $0x18] sm:$0xff] }
 0x23a   :  { %v672_v25 = vmul.f32 0.01, %v656_v24 }
 0x23c   :  { %v688_v29 = vmax.f32 %v656_v24, %v672_v25  ;;  %v709_v24 = vld [vmem:[#allocation9] sm:$0xff] }
 0x23d   :  { %779 = vperm.xlu1 %1017, %v687_v48   ;;  %732 = vmatpush.msrb.mxu3 %v709_v24  ;;  %v708_v48 = vld [vmem:[#allocation4] sm:$0xff]  ;;  %v707_v25 = vld [vmem:[%s1626_s11 + $0x18] sm:$0xff]  ;;  %v900_v24 = vld [vmem:[%s1630_s15 + $0x10] sm:$0xff] }
 0x23e   :  { %989 = vmatmul.msk.f32.vlgmr.msrb.gmra.mxu3 %vm713_vm2, %v708_v48  ;;  %v899_v48 = vld [vmem:[%s1630_s15 + $0x8] sm:$0xff] }
 0x23f   :  { %v611_v26 = vpop.xlane.xlu1 %610  ;;  %752 = vmatpush.msra.mxu3 %v707_v25  ;;  %v898_v25 = vld [vmem:[%s1630_s15] sm:$0xff] }
 0x240   :  { %v657_v27 = vadd.f32 %v1531_v17, %v611_v26 }
 0x242   :  { %v673_v30 = vmul.f32 0.01, %v657_v27 }
 0x244   :  { %782 = vperm.xlu2 %1018, %v688_v29   ;;  %v689_v31 = vmax.f32 %v657_v27, %v673_v30  ;;  %v705_v27 = vld [vmem:[%s1626_s11 + $0x8] sm:$0xff]  ;;  %v704_v29 = vld [vmem:[%s1626_s11] sm:$0xff] }
 0x245   :  { %v703_v30 = vld [vmem:[%s1643_s24] sm:$0xff] }
 0x247   :  { %v614_v52 = vpop.xlane.xlu1 %613 }
 0x248   :  { %v658_v32 = vadd.f32 %v1531_v17, %v614_v52  ;;  %785 = vperm.xlu0 %1019, %v689_v31  }
 0x24a   :  { %v674_v33 = vmul.f32 0.01, %v658_v32 }
 0x24c   :  { %v690_v34 = vmax.f32 %v658_v32, %v674_v33  ;;  %v761_v32 = vld [vmem:[#allocation11 + $0x8] sm:$0xff] }
 0x24e   :  { %788 = vperm.xlu2 %1018, %v690_v34  }
 0x24f   :  { %v617_v35 = vpop.xlane.xlu2 %616 }
 0x250   :  { %v659_v36 = vadd.f32 %v1531_v17, %v617_v35  ;;  %v760_v35 = vld [vmem:[#allocation11] sm:$0xff] }
 0x252   :  { %v675_v37 = vmul.f32 0.01, %v659_v36 }
 0x254   :  { %v691_v38 = vmax.f32 %v659_v36, %v675_v37 }
 0x256   :  { %791 = vperm.xlu1 %1017, %v691_v38  }
 0x257   :  { %v620_v39 = vpop.xlane.xlu2 %619 }
 0x258   :  { %v660_v40 = vadd.f32 %v1531_v17, %v620_v39 }
 0x25a   :  { %v676_v41 = vmul.f32 0.01, %v660_v40 }
 0x25c   :  { %v692_v42 = vmax.f32 %v660_v40, %v676_v41  ;;  %v826_v40 = vlaneseq }
 0x25e   :  { %794 = vperm.xlu2 %1018, %v692_v42   ;;  %v827_v42 = vand.u32 127, %v826_v40 }
 0x25f   :  { %v623_v43 = vpop.xlane.xlu0 %622 }
 0x260   :  { %v661_v44 = vadd.f32 %v1531_v17, %v623_v43 }
 0x262   :  { %v677_v45 = vmul.f32 0.01, %v661_v44 }
 0x264   :  { %v693_v47 = vmax.f32 %v661_v44, %v677_v45  ;;  %v829_v45 = vadd.s32 4294967288, %v827_v42 }
 0x266   :  { %797 = vperm.xlu1 %1017, %v693_v47  }
 0x267   :  { %v626_v49 = vpop.xlane.xlu1 %625 }
 0x268   :  { %v662_v50 = vadd.f32 %v1531_v17, %v626_v49 }
 0x26a   :  { %v678_v51 = vmul.f32 0.01, %v662_v50 }
 0x26c   :  { %v694_v53 = vmax.f32 %v662_v50, %v678_v51 }
 0x26e   :  { %800 = vperm.xlu2 %1018, %v694_v53  }
 0x26f   :  { %v629_v28 = vpop.xlane.xlu2 %628 }
 0x270   :  { %v663_v54 = vadd.f32 %v1531_v17, %v629_v28 }
 0x272   :  { %v679_v46 = vmul.f32 0.01, %v663_v54 }
 0x274   :  { %v695_v55 = vmax.f32 %v663_v54, %v679_v46 }
 0x276   :  { %803 = vperm.xlu1 %1017, %v695_v55  }
 0x277   :  { %v632_v56 = vpop.xlane.xlu0 %631 }
 0x278   :  { %v664_v57 = vadd.f32 %v1531_v17, %v632_v56 }
 0x27a   :  { %v680_v58 = vmul.f32 0.01, %v664_v57 }
 0x27c   :  { %v696_v59 = vmax.f32 %v664_v57, %v680_v58 }
 0x27e   :  { %806 = vperm.xlu0 %1019, %v696_v59  }
 0x27f   :  { %v635_v60 = vpop.xlane.xlu1 %634 }
 0x280   :  { %v665_v61 = vadd.f32 %v1531_v17, %v635_v60 }
 0x282   :  { %v681_v62 = vmul.f32 0.01, %v665_v61 }
 0x284   :  { %v697_v63 = vmax.f32 %v665_v61, %v681_v62 }
 0x286   :  { %809 = vperm.xlu2 %1018, %v697_v63  }
 0x287   :  { %v638_v0 = vpop.xlane.xlu2 %637 }
 0x288   :  { %v666_v1 = vadd.f32 %v1531_v17, %v638_v0 }
 0x28a   :  { %v682_v2 = vmul.f32 0.01, %v666_v1 }
 0x28c   :  { %v698_v3 = vmax.f32 %v666_v1, %v682_v2 }
 0x28e   :  { %812 = vperm.xlu1 %1017, %v698_v3  }
 0x28f   :  { %v641_v4 = vpop.xlane.xlu0 %640 }
 0x290   :  { %v667_v5 = vadd.f32 %v1531_v17, %v641_v4 }
 0x292   :  { %v683_v6 = vmul.f32 0.01, %v667_v5 }
 0x294   :  { %v699_v7 = vmax.f32 %v667_v5, %v683_v6 }
 0x296   :  { %815 = vperm.xlu0 %1019, %v699_v7  }
 0x297   :  { %v644_v8 = vpop.xlane.xlu1 %643 }
 0x298   :  { %v668_v9 = vadd.f32 %v1531_v17, %v644_v8 }
 0x29a   :  { %v684_v10 = vmul.f32 0.01, %v668_v9 }
 0x29c   :  { %v700_v11 = vmax.f32 %v668_v9, %v684_v10 }
 0x29e   :  { %818 = vperm.xlu2 %1018, %v700_v11  }
 0x29f   :  { %v647_v12 = vpop.xlane.xlu2 %646 }
 0x2a0   :  { %v669_v13 = vadd.f32 %v1531_v17, %v647_v12 }
 0x2a2   :  { %v685_v14 = vmul.f32 0.01, %v669_v13 }
 0x2a4   :  { %v701_v15 = vmax.f32 %v669_v13, %v685_v14 }
 0x2a6   :  { %821 = vperm.xlu1 %1017, %v701_v15  }
 0x2a7   :  { %v650_v16 = vpop.xlane.xlu0 %649  ;;  %v783_v26 = vpop.permute.xlu2 %782 }
 0x2a8   :  { %v670_v18 = vadd.f32 %v1531_v17, %v650_v16  ;;  %v706_v17 = vld [vmem:[%s1626_s11 + $0x10] sm:$0xff]  ;;  %v830_v55 = vperm.slane %v783_v26, %v829_v45 }
 0x2a9   :  { %753 = vmatpush.msra.mxu3 %v706_v17 }
 0x2aa   :  { %v686_v19 = vmul.f32 0.01, %v670_v18 }
 0x2ab   :  { %754 = vmatpush.msra.mxu3 %v705_v27 }
 0x2ac   :  { %v702_v20 = vmax.f32 %v670_v18, %v686_v19  ;;  %v905_v19 = vld [vmem:[%s1630_s15 + $0x38] sm:$0xff] }
 0x2ad   :  { %755 = vmatpush.msra.mxu3 %v704_v29  ;;  %v1025_v29 = vld [vmem:[%s1629_s14] ss:$0 sm:$0xff] }
 0x2ae   :  { %824 = vperm.xlu0 %1019, %v702_v20   ;;  %990 = vmatmul.msk.f32.vlgmr.msra.gmra.mxu3 %vm713_vm2, %v703_v30  ;;  %v904_v20 = vld [vmem:[%s1630_s15 + $0x30] sm:$0xff] }
 0x2af   :  { %v780_v31 = vpop.permute.xlu1 %779  ;;  %v789_v52 = vpop.permute.xlu2 %788  ;;  %884 = vmatpush.msrb.mxu3 %v761_v32 }
 0x2b0   :  { %v828_v51 = vperm.slane %v780_v31, %v827_v42  ;;  %v834_v53 = vperm.slane %v789_v52, %v829_v45 }
 0x2b1   :  { %885 = vmatpush.msrb.mxu3 %v760_v35 }
 0x2b2   :  { %v832_v63 = vsel %vm831_vm3, %v830_v55, %v828_v51 }
 0x2b3   :  { %921 = vmatpush.msra.mxu3 %v905_v19 }
 0x2b5   :  { %922 = vmatpush.msra.mxu3 %v904_v20 }
 0x2b7   :  { %923 = vmatpush.msra.mxu3 %v903_v21 }
 0x2b8   :  { %v795_v34 = vpop.permute.xlu2 %794 }
 0x2b9   :  { %v837_v54 = vperm.slane %v795_v34, %v829_v45  ;;  %924 = vmatpush.msra.mxu3 %v902_v22  ;;  %v1026_v34 = vld [vmem:[%s1631_s16] ss:$0 sm:$0xff] }
 0x2ba   :  { %v786_v37 = vpop.permute.xlu0 %785 }
 0x2bb   :  { %v833_v47 = vperm.slane %v786_v37, %v827_v42  ;;  %925 = vmatpush.msra.mxu3 %v901_v23 }
 0x2bd   :  { %v835_v56 = vsel %vm831_vm3, %v834_v53, %v833_v47  ;;  %926 = vmatpush.msra.mxu3 %v900_v24 }
 0x2be   :  { %v855_v2 = vsel %vm854_vm4, %v835_v56, %v832_v63 }
 0x2bf   :  { %927 = vmatpush.msra.mxu3 %v899_v48 }
 0x2c1   :  { %928 = vmatpush.msra.mxu3 %v898_v25  ;;  %v734_v17 = vpop.f32.mrf.mxu3 }
 0x2c8   :  { %v792_v33 = vpop.permute.xlu1 %791  ;;  %v801_v38 = vpop.permute.xlu2 %800 }
 0x2c9   :  { %v836_v49 = vperm.slane %v792_v33, %v827_v42  ;;  %v840_v57 = vperm.slane %v801_v38, %v829_v45  ;;  %v1027_v38 = vld [vmem:[%s1632_s17] ss:$0 sm:$0xff] }
 0x2cb   :  { %v838_v60 = vsel %vm831_vm3, %v837_v54, %v836_v49 }
 0x2cc   :  { %v857_v6 = vsel %vm856_vm5, %v838_v60, %v855_v2 }
 0x2d8   :  { %v798_v36 = vpop.permute.xlu1 %797 }
 0x2d9   :  { %v839_v28 = vperm.slane %v798_v36, %v827_v42 }
 0x2db   :  { %v841_v0 = vsel %vm831_vm3, %v840_v57, %v839_v28 }
 0x2dc   :  { %v859_v8 = vsel %vm858_vm6, %v841_v0, %v857_v6 }
 0x2e0   :  { %v810_v43 = vpop.permute.xlu2 %809 }
 0x2e1   :  { %v845_v1 = vperm.slane %v810_v43, %v827_v42 }
 0x2e8   :  { %v804_v39 = vpop.permute.xlu1 %803 }
 0x2e9   :  { %v842_v61 = vperm.slane %v804_v39, %v827_v42 }
 0x2f0   :  { %v807_v41 = vpop.permute.xlu0 %806 }
 0x2f1   :  { %v843_v46 = vperm.slane %v807_v41, %v829_v45 }
 0x2f3   :  { %v844_v3 = vsel %vm831_vm3, %v843_v46, %v842_v61 }
 0x2f4   :  { %v861_v11 = vsel %vm860_vm7, %v844_v3, %v859_v8 }
 0x2f8   :  { %v819_v58 = vpop.permute.xlu2 %818 }
 0x2f9   :  { %v849_v4 = vperm.slane %v819_v58, %v829_v45 }
 0x300   :  { %v813_v44 = vpop.permute.xlu1 %812 }
 0x301   :  { %v846_v59 = vperm.slane %v813_v44, %v829_v45 }
 0x303   :  { %v847_v7 = vsel %vm831_vm3, %v846_v59, %v845_v1 }
 0x304   :  { %v863_v14 = vsel %vm862_vm8, %v847_v7, %v861_v11 }
 0x308   :  { %v816_v50 = vpop.permute.xlu0 %815 }
 0x309   :  { %v848_v62 = vperm.slane %v816_v50, %v827_v42 }
 0x30b   :  { %v850_v9 = vsel %vm831_vm3, %v849_v4, %v848_v62 }
 0x30c   :  { %v865_v15 = vsel %vm864_vm9, %v850_v9, %v863_v14 }
 0x318   :  { %v822_v5 = vpop.permute.xlu1 %821 }
 0x319   :  { %v851_v12 = vperm.slane %v822_v5, %v827_v42  ;;  %v1028_v42 = vld [vmem:[#allocation3] ss:$0 sm:$0xff] }
 0x320   :  { %v825_v10 = vpop.permute.xlu0 %824 }
 0x321   :  { %v852_v13 = vperm.slane %v825_v10, %v829_v45 }
 0x323   :  { %v853_v16 = vsel %vm831_vm3, %v852_v13, %v851_v12 }
 0x324   :  { %v867_v18 = vsel %vm866_vm10, %v853_v16, %v865_v15 }
 0x325   :  { %991 = vmatmul.msk.f32.vlgmr.msrb.gmra.mxu3 %vm162_vm0, %v867_v18 }
 0x331   :  { %v757_v26 = vpop.f32.mrf.mxu3 }
 0x332   :  { %v758_v27 = vadd.f32 %v757_v26, %v734_v17 }
 0x3a8   :  { %v887_v30 = vpop.f32.mrf.mxu3 }
 0x3a9   :  { %v890_v31 = vadd.f32 %v887_v30, %v758_v27 }
 0x3ab   :  { %v895_v52 = vadd.f32 %v1025_v29, %v890_v31 }
 0x3ad   :  { %v896_v32 = vmul.f32 0.01, %v895_v52 }
 0x3af   :  { %v897_v33 = vmax.f32 %v895_v52, %v896_v32 }
 0x3b1   :  { %992 = vmatmul.msk.f32.vlgmr.msra.gmra.mxu3 %vm320_vm1, %v897_v33 }
 0x434   :  { %v930_v35 = vpop.f32.mrf.mxu3 }
 0x435   :  { %v931_v36 = vadd.f32 %v1026_v34, %v930_v35 }
 0x437   :  { %v933_v37 = vmul.f32 0.01, %v931_v36 }
 0x439   :  { %v934_v39 = vmax.f32 %v931_v36, %v933_v37 }
 0x43b   :  { %v939_v40 = vmul.f32 %v1027_v38, %v934_v39 }
 0x43d   :  { %v940_v41 = vsel %vm713_vm2, %v939_v40, 0.0 }
 0x43e   :  { %941 = vadd.xlane.f32.xlu2 %v940_v41 }
 0x4b1   :  { %v942_v43 = vpop.xlane.xlu2 %941 }
 0x4b2   :  { %v947_v44 = vadd.f32 %v1028_v42, %v942_v43 }
 0x4b4   :  { %949 = vst.msk [vmem:[%s1633_s19] sm:$0xff] %vm948_vm11, %v947_v44 }
 0x4b5   :  { %954 = vsyncpa [#allocation5], 1 }
 0x4b6   :  { %955 = vsyncpa [#allocation7], 1 }
 0x4b7   :  { %956 = vsyncpa [#allocation10], 1 }

</bundles_post_ra>
